<compile_context>
chip_gen: v5e
topology: v5e:2x2
jax: 0.10.0
libtpu: 0.0.40
codegen_flags: <defaults>
</compile_context>

<pallas_src>
import math

import jax
import jax.numpy as jnp
from jax.experimental import pallas as pl
from jax.experimental.pallas import tpu as pltpu


def _round_up(x, m):
    return ((x + m - 1) // m) * m


def gconv_kernel(adj_ref, xk_ref, xr_ref, w_ref, wl_ref, b_ref, o_ref, acc_ref):
    # adj_ref: (TN, TK)        bf16 adjacency tile (output rows j, contraction cols k)
    # xk_ref:  (TK, B*F_in)    bf16 x chunk for the contraction (all batches in lanes)
    # xr_ref:  (TN, B*F_in)    bf16 x rows of the output node tile (self-loop term)
    # w_ref:   (F_in, F_pad)   bf16 neighbour weight (F_out zero-padded to F_pad lanes)
    # wl_ref:  (F_in, F_pad)   bf16 self-loop weight
    # b_ref:   (1, F_pad)      f32 bias
    # o_ref:   (B, TN, F_pad)  f32 output tile (lane-dense)
    # acc_ref: (TN, B*F_in)    f32 scratch accumulating adj @ x over the k axis
    k = pl.program_id(1)

    @pl.when(k == 0)
    def _():
        acc_ref[...] = jnp.zeros_like(acc_ref)

    # One wide aggregation matmul per grid step: every batch element sits side
    # by side in the lane dimension, so the MXU output width is B*F_in instead
    # of F_in (up to Bx fewer MXU passes than a per-batch loop).
    acc_ref[...] += jnp.dot(adj_ref[...], xk_ref[...],
                            preferred_element_type=jnp.float32)

    @pl.when(k == pl.num_programs(1) - 1)
    def _():
        B = o_ref.shape[0]
        F_in = w_ref.shape[0]
        w = w_ref[...]
        wl = wl_ref[...]
        bias = b_ref[...]
        ax = acc_ref[...]            # (TN, B*F_in) f32
        xr = xr_ref[...]             # (TN, B*F_in) bf16
        for b in range(B):           # B is small & static -> unrolled
            sl = slice(b * F_in, (b + 1) * F_in)
            out_b = (jnp.dot(ax[:, sl].astype(w.dtype), w,
                             preferred_element_type=jnp.float32)
                     + jnp.dot(xr[:, sl], wl,
                               preferred_element_type=jnp.float32)
                     + bias)
            o_ref[b] = out_b.astype(o_ref.dtype)


def _default_vmem_limit_bytes():
    # Default scoped VMEM (16 MiB v5e / 32 MiB v6e,v7x) is far below physical
    # (128 / 128 / 64 MiB); raise it explicitly, generation-aware.
    try:
        kind = jax.devices()[0].device_kind.lower()
    except Exception:
        kind = ""
    if "v5" in kind or "v6" in kind:
        return 100 * 1024 * 1024
    return 48 * 1024 * 1024          # conservative: v7x has only 64 MiB physical


def gconv_forward(x, adj, weight, loop_weight, bias=None, *,
                  node_tile=512, compute_dtype=jnp.bfloat16,
                  vmem_limit_bytes=None):
    """out[b] = adj @ x[b] @ W + x[b] @ W_loop (+ bias)."""
    B, N, F_in = x.shape
    F_out = weight.shape[1]
    assert adj.shape == (N, N)
    assert node_tile % 128 == 0

    if vmem_limit_bytes is None:
        vmem_limit_bytes = _default_vmem_limit_bytes()

    # Weights as bf16 operands (f32 accumulation in-kernel); F_out padded to a
    # multiple of 128 so output stores are lane-dense.
    F_pad = _round_up(F_out, 128)
    w = jnp.pad(weight.astype(compute_dtype), ((0, 0), (0, F_pad - F_out)))
    wl = jnp.pad(loop_weight.astype(compute_dtype), ((0, 0), (0, F_pad - F_out)))
    if bias is None:
        b2d = jnp.zeros((1, F_pad), jnp.float32)
    else:
        b2d = jnp.pad(bias.reshape(1, F_out).astype(jnp.float32),
                      ((0, 0), (0, F_pad - F_out)))

    # Tiling: TN output node rows per step, TK contraction columns per step.
    # TK must be a multiple of 128 (or the full padded extent) to satisfy the
    # (8, 128) block constraint on adj's lane axis.
    N8 = _round_up(N, 8)
    if N8 <= node_tile:
        # Small graph: no contraction tiling, but still split the node axis in
        # two (when possible) so both v7x TensorCores get work.
        TN = N8 if N8 <= 8 else _round_up((N8 + 1) // 2, 8)
        N_pad = _round_up(N8, TN)
        TK = N_pad
    else:
        TN = node_tile
        TK = node_tile
        N_pad = _round_up(N, node_tile)

    # Wrapper-side layout plumbing: xcat[n, b*F_in + f] = x[b, n, f] so the
    # kernel aggregation matmul has RHS width B*F_in (all batches at once).
    BF = B * F_in
    xcat = jnp.transpose(x, (1, 0, 2)).reshape(N, BF).astype(compute_dtype)
    adjp = adj.astype(compute_dtype)
    if N_pad != N:
        xcat = jnp.pad(xcat, ((0, N_pad - N), (0, 0)))
        adjp = jnp.pad(adjp, ((0, N_pad - N), (0, N_pad - N)))

    grid = (N_pad // TN, N_pad // TK)

    out = pl.pallas_call(
        gconv_kernel,
        out_shape=jax.ShapeDtypeStruct((B, N_pad, F_pad), jnp.float32),
        grid_spec=pltpu.PrefetchScalarGridSpec(
            num_scalar_prefetch=0,
            grid=grid,
            in_specs=[
                # adj tiled on both axes: streamed from HBM exactly once, and
                # each block bounded by node_tile^2 independent of N.
                pl.BlockSpec((TN, TK), lambda j, k: (j, k)),
                # x chunk for the contraction (changes along k).
                pl.BlockSpec((TK, BF), lambda j, k: (k, 0)),
                # x rows of the output node tile (changes along j only).
                pl.BlockSpec((TN, BF), lambda j, k: (j, 0)),
                # Grid-invariant small operands (fetched once; a few KiB each,
                # so the default double buffer costs nothing that matters).
                pl.BlockSpec((F_in, F_pad), lambda j, k: (0, 0)),
                pl.BlockSpec((F_in, F_pad), lambda j, k: (0, 0)),
                pl.BlockSpec((1, F_pad), lambda j, k: (0, 0)),
            ],
            out_specs=pl.BlockSpec((B, TN, F_pad), lambda j, k: (0, j, 0)),
            scratch_shapes=[pltpu.VMEM((TN, BF), jnp.float32)],
        ),
        compiler_params=pltpu.CompilerParams(
            # Node-row tiles are independent (megacore-shardable); the
            # contraction axis carries the accumulator -> sequential.
            dimension_semantics=("parallel", "arbitrary"),
            vmem_limit_bytes=vmem_limit_bytes,
        ),
    )(adjp, xcat, xcat, w, wl, b2d)

    # Strip node / feature padding.
    return out[:, :N, :F_out]


def xavier_uniform(key, fan_in, fan_out, dtype=jnp.float32):
    bound = math.sqrt(6.0 / (fan_in + fan_out))
    return jax.random.uniform(key, (fan_in, fan_out), dtype, -bound, bound)


if __name__ == "__main__":
    B, N, F_in, F_out = 2, 16, 8, 32

    key = jax.random.PRNGKey(0)
    k_x, k_w, k_wl, k_b, k_adj = jax.random.split(key, 5)

    # Parameters (mirrors GConv.__init__ / reset_parameters; bias randomized
    # here so the bias path is actually exercised).
    weight = xavier_uniform(k_w, F_in, F_out)
    loop_weight = xavier_uniform(k_wl, F_in, F_out)
    bias = 0.1 * jax.random.normal(k_b, (F_out,), dtype=jnp.float32)

    # Fixed (non-trainable) adjacency: symmetric, row-normalized.
    adj_raw = jax.random.uniform(k_adj, (N, N), jnp.float32)
    adj_raw = (adj_raw + adj_raw.T) * 0.5
    adj = adj_raw / jnp.sum(adj_raw, axis=-1, keepdims=True)

    # Example inputs (B, N, F_in).
    x = jax.random.normal(k_x, (B, N, F_in), dtype=jnp.float32)

    out = jax.block_until_ready(gconv_forward(x, adj, weight, loop_weight, bias))

    # Reference (same math as the PyTorch forward, in f32).
    support = jnp.einsum("bnf,fo->bno", x, weight)
    support_loop = jnp.einsum("bnf,fo->bno", x, loop_weight)
    ref = jnp.einsum("nm,bmo->bno", adj, support) + support_loop + bias

    assert out.shape == (B, N, F_out)
    # bf16 operands (f32 accumulation) -> loosened tolerance vs the f32 reference.
    err = float(jnp.max(jnp.abs(out - ref)))
    assert jnp.allclose(out, ref, atol=2e-2, rtol=2e-2), err

    print("KERNEL_OK")
</pallas_src>

<mosaic_0001>
module attributes {stable_mosaic.version = 11 : i64} {
  func.func @gconv_kernel(%arg0: i32, %arg1: i32, %arg2: memref<8x16xbf16, #tpu.memory_space<vmem>>, %arg3: memref<16x16xbf16, #tpu.memory_space<vmem>>, %arg4: memref<8x16xbf16, #tpu.memory_space<vmem>>, %arg5: memref<8x128xbf16, #tpu.memory_space<vmem>>, %arg6: memref<8x128xbf16, #tpu.memory_space<vmem>>, %arg7: memref<1x128xf32, #tpu.memory_space<vmem>>, %arg8: memref<2x8x128xf32, #tpu.memory_space<vmem>>, %arg9: memref<8x16xf32, #tpu.memory_space<vmem>>) attributes {dimension_semantics = [#tpu.dimension_semantics<parallel>, #tpu.dimension_semantics<arbitrary>], iteration_bounds = array<i64: 2, 1>, scalar_prefetch = 0 : i64, scratch_operands = 1 : i64, tpu.core_type = #tpu.core_type<tc>, window_params = [{transform_indices = @transform_0, window_bounds = array<i64: 8, 16>}, {transform_indices = @transform_1, window_bounds = array<i64: 16, 16>}, {transform_indices = @transform_2, window_bounds = array<i64: 8, 16>}, {pipeline_mode = #tpu.pipeline_mode<synchronous>, transform_indices = @transform_3, window_bounds = array<i64: 8, 128>}, {pipeline_mode = #tpu.pipeline_mode<synchronous>, transform_indices = @transform_4, window_bounds = array<i64: 8, 128>}, {pipeline_mode = #tpu.pipeline_mode<synchronous>, transform_indices = @transform_5, window_bounds = array<i64: 1, 128>}, {transform_indices = @transform_6, window_bounds = array<i64: 2, 8, 128>}]} {
    %c0_i32 = arith.constant 0 : i32
    %0 = arith.cmpi eq, %arg1, %c0_i32 : i32
    %1 = arith.extui %0 : i1 to i32
    %c0_i32_0 = arith.constant 0 : i32
    %2 = arith.cmpi ne, %1, %c0_i32_0 : i32
    scf.if %2 {
      %cst_10 = arith.constant 0.000000e+00 : f32
      %12 = vector.broadcast %cst_10 : f32 to vector<8x16xf32>
      %c0_11 = arith.constant 0 : index
      %c0_12 = arith.constant 0 : index
      %13 = vector.load %arg9[%c0_11, %c0_12] : memref<8x16xf32, #tpu.memory_space<vmem>>, vector<8x16xf32>
      tpu.vector_store %arg9[%c0_11, %c0_12], %12 {strides = array<i32>} : memref<8x16xf32, #tpu.memory_space<vmem>>, vector<8x16xf32>,
    } else {
    }
    %c0 = arith.constant 0 : index
    %c0_1 = arith.constant 0 : index
    %3 = vector.load %arg9[%c0, %c0_1] : memref<8x16xf32, #tpu.memory_space<vmem>>, vector<8x16xf32>
    %c0_2 = arith.constant 0 : index
    %c0_3 = arith.constant 0 : index
    %4 = vector.load %arg2[%c0_2, %c0_3] : memref<8x16xbf16, #tpu.memory_space<vmem>>, vector<8x16xbf16>
    %c0_4 = arith.constant 0 : index
    %c0_5 = arith.constant 0 : index
    %5 = vector.load %arg3[%c0_4, %c0_5] : memref<16x16xbf16, #tpu.memory_space<vmem>>, vector<16x16xbf16>
    %cst = arith.constant dense<0.000000e+00> : vector<8x16xf32>
    %6 = tpu.matmul %4, %5, %cst {dimension_numbers = #tpu.dot_dimension_numbers<[1], [0], [0], [1], [0, 0, 1, 1], [], []>} : vector<8x16xbf16>, vector<16x16xbf16>, vector<8x16xf32> -> vector<8x16xf32>
    %7 = arith.addf %3, %6 : vector<8x16xf32>
    %c0_6 = arith.constant 0 : index
    %c0_7 = arith.constant 0 : index
    %8 = vector.load %arg9[%c0_6, %c0_7] : memref<8x16xf32, #tpu.memory_space<vmem>>, vector<8x16xf32>
    tpu.vector_store %arg9[%c0_6, %c0_7], %7 {strides = array<i32>} : memref<8x16xf32, #tpu.memory_space<vmem>>, vector<8x16xf32>,
    %c0_i32_8 = arith.constant 0 : i32
    %9 = arith.cmpi eq, %arg1, %c0_i32_8 : i32
    %10 = arith.extui %9 : i1 to i32
    %c0_i32_9 = arith.constant 0 : i32
    %11 = arith.cmpi ne, %10, %c0_i32_9 : i32
    scf.if %11 {
      %c0_10 = arith.constant 0 : index
      %c0_11 = arith.constant 0 : index
      %12 = vector.load %arg5[%c0_10, %c0_11] : memref<8x128xbf16, #tpu.memory_space<vmem>>, vector<8x128xbf16>
      %c0_12 = arith.constant 0 : index
      %c0_13 = arith.constant 0 : index
      %13 = vector.load %arg6[%c0_12, %c0_13] : memref<8x128xbf16, #tpu.memory_space<vmem>>, vector<8x128xbf16>
      %c0_14 = arith.constant 0 : index
      %c0_15 = arith.constant 0 : index
      %14 = vector.load %arg7[%c0_14, %c0_15] : memref<1x128xf32, #tpu.memory_space<vmem>>, vector<1x128xf32>
      %c0_16 = arith.constant 0 : index
      %c0_17 = arith.constant 0 : index
      %15 = vector.load %arg9[%c0_16, %c0_17] : memref<8x16xf32, #tpu.memory_space<vmem>>, vector<8x16xf32>
      %c0_18 = arith.constant 0 : index
      %c0_19 = arith.constant 0 : index
      %16 = vector.load %arg4[%c0_18, %c0_19] : memref<8x16xbf16, #tpu.memory_space<vmem>>, vector<8x16xbf16>
      %17 = vector.extract_strided_slice %15 {offsets = [0, 0], sizes = [8, 8], strides = [1, 1]} : vector<8x16xf32> to vector<8x8xf32>
      %18 = arith.truncf %17 : vector<8x8xf32> to vector<8x8xbf16>
      %cst_20 = arith.constant dense<0.000000e+00> : vector<8x128xf32>
      %19 = tpu.matmul %18, %12, %cst_20 {dimension_numbers = #tpu.dot_dimension_numbers<[1], [0], [0], [1], [0, 0, 1, 1], [], []>} : vector<8x8xbf16>, vector<8x128xbf16>, vector<8x128xf32> -> vector<8x128xf32>
      %20 = vector.extract_strided_slice %16 {offsets = [0, 0], sizes = [8, 8], strides = [1, 1]} : vector<8x16xbf16> to vector<8x8xbf16>
      %cst_21 = arith.constant dense<0.000000e+00> : vector<8x128xf32>
      %21 = tpu.matmul %20, %13, %cst_21 {dimension_numbers = #tpu.dot_dimension_numbers<[1], [0], [0], [1], [0, 0, 1, 1], [], []>} : vector<8x8xbf16>, vector<8x128xbf16>, vector<8x128xf32> -> vector<8x128xf32>
      %22 = arith.addf %19, %21 : vector<8x128xf32>
      %23 = vector.broadcast %14 : vector<1x128xf32> to vector<8x128xf32>
      %24 = arith.addf %22, %23 : vector<8x128xf32>
      %c0_22 = arith.constant 0 : index
      %c0_23 = arith.constant 0 : index
      %c0_24 = arith.constant 0 : index
      %25 = vector.load %arg8[%c0_22, %c0_23, %c0_24] : memref<2x8x128xf32, #tpu.memory_space<vmem>>, vector<1x8x128xf32>
      %26 = vector.shape_cast %25 : vector<1x8x128xf32> to vector<8x128xf32>
      %27 = vector.shape_cast %24 : vector<8x128xf32> to vector<1x8x128xf32>
      tpu.vector_store %arg8[%c0_22, %c0_23, %c0_24], %27 {strides = array<i32>} : memref<2x8x128xf32, #tpu.memory_space<vmem>>, vector<1x8x128xf32>,
      %28 = vector.extract_strided_slice %15 {offsets = [0, 8], sizes = [8, 8], strides = [1, 1]} : vector<8x16xf32> to vector<8x8xf32>
      %29 = arith.truncf %28 : vector<8x8xf32> to vector<8x8xbf16>
      %cst_25 = arith.constant dense<0.000000e+00> : vector<8x128xf32>
      %30 = tpu.matmul %29, %12, %cst_25 {dimension_numbers = #tpu.dot_dimension_numbers<[1], [0], [0], [1], [0, 0, 1, 1], [], []>} : vector<8x8xbf16>, vector<8x128xbf16>, vector<8x128xf32> -> vector<8x128xf32>
      %31 = vector.extract_strided_slice %16 {offsets = [0, 8], sizes = [8, 8], strides = [1, 1]} : vector<8x16xbf16> to vector<8x8xbf16>
      %cst_26 = arith.constant dense<0.000000e+00> : vector<8x128xf32>
      %32 = tpu.matmul %31, %13, %cst_26 {dimension_numbers = #tpu.dot_dimension_numbers<[1], [0], [0], [1], [0, 0, 1, 1], [], []>} : vector<8x8xbf16>, vector<8x128xbf16>, vector<8x128xf32> -> vector<8x128xf32>
      %33 = arith.addf %30, %32 : vector<8x128xf32>
      %34 = vector.broadcast %14 : vector<1x128xf32> to vector<8x128xf32>
      %35 = arith.addf %33, %34 : vector<8x128xf32>
      %c1 = arith.constant 1 : index
      %c0_27 = arith.constant 0 : index
      %c0_28 = arith.constant 0 : index
      %36 = vector.load %arg8[%c1, %c0_27, %c0_28] : memref<2x8x128xf32, #tpu.memory_space<vmem>>, vector<1x8x128xf32>
      %37 = vector.shape_cast %36 : vector<1x8x128xf32> to vector<8x128xf32>
      %38 = vector.shape_cast %35 : vector<8x128xf32> to vector<1x8x128xf32>
      tpu.vector_store %arg8[%c1, %c0_27, %c0_28], %38 {strides = array<i32>} : memref<2x8x128xf32, #tpu.memory_space<vmem>>, vector<1x8x128xf32>,
    } else {
    }
    return
  }
  func.func @transform_0(%arg0: i32, %arg1: i32) -> (i32, i32) {
    %c0_i32 = arith.constant 0 : i32
    return %arg0, %arg1 : i32, i32
  }
  func.func @transform_1(%arg0: i32, %arg1: i32) -> (i32, i32) {
    %c0_i32 = arith.constant 0 : i32
    %c0_i32_0 = arith.constant 0 : i32
    return %arg1, %c0_i32 : i32, i32
  }
  func.func @transform_2(%arg0: i32, %arg1: i32) -> (i32, i32) {
    %c0_i32 = arith.constant 0 : i32
    %c0_i32_0 = arith.constant 0 : i32
    return %arg0, %c0_i32 : i32, i32
  }
  func.func @transform_3(%arg0: i32, %arg1: i32) -> (i32, i32) {
    %c0_i32 = arith.constant 0 : i32
    %c0_i32_0 = arith.constant 0 : i32
    %c0_i32_1 = arith.constant 0 : i32
    return %c0_i32, %c0_i32_0 : i32, i32
  }
  func.func @transform_4(%arg0: i32, %arg1: i32) -> (i32, i32) {
    %c0_i32 = arith.constant 0 : i32
    %c0_i32_0 = arith.constant 0 : i32
    %c0_i32_1 = arith.constant 0 : i32
    return %c0_i32, %c0_i32_0 : i32, i32
  }
  func.func @transform_5(%arg0: i32, %arg1: i32) -> (i32, i32) {
    %c0_i32 = arith.constant 0 : i32
    %c0_i32_0 = arith.constant 0 : i32
    %c0_i32_1 = arith.constant 0 : i32
    return %c0_i32, %c0_i32_0 : i32, i32
  }
  func.func @transform_6(%arg0: i32, %arg1: i32) -> (i32, i32, i32) {
    %c0_i32 = arith.constant 0 : i32
    %c0_i32_0 = arith.constant 0 : i32
    %c0_i32_1 = arith.constant 0 : i32
    return %c0_i32, %arg0, %c0_i32_0 : i32, i32, i32
  }
}

</mosaic_0001>

<bundles_post_ra>
// kernel: tpu_custom_call.1
= control target key start
LH: loop header
LB: loop body
LE: loop exit
PB: predicated region body
PF: predicated region fallthrough
CT: control target
= control target key end

     0   :  { %s1286_s0 = inlined_call_operand.hbm [shape: bf16[16,16], index: 0, kind: input, shape index: {}]   ;;  %s1287_s1 = inlined_call_operand.hbm [shape: bf16[16,16], index: 1, kind: input, shape index: {}]   ;;  %s1288_s2 = inlined_call_operand.hbm [shape: bf16[16,16], index: 2, kind: input, shape index: {}]   ;;  %s1289_s3 = inlined_call_operand.hbm [shape: bf16[8,128], index: 3, kind: input, shape index: {}]   ;;  %s1290_s4 = inlined_call_operand.hbm [shape: bf16[8,128], index: 4, kind: input, shape index: {}]   ;;  %s1291_s5 = inlined_call_operand.vmem [shape: f32[1,128], index: 5, kind: input, shape index: {}]   ;;  %s1292_s6 = inlined_call_operand.hbm [shape: f32[2,16,128], index: 6, kind: output, shape index: {}]  }
   0x1   :  { %1299 = sst [smem:[#allocation25_spill]] %s1286_s0 }
   0x2   :  { %1300 = sst [smem:[#allocation26_spill]] %s1287_s1 }
   0x3   :  { %11 = vsyncpa [#allocation4], 0 }
   0x4   :  { %13 = vsyncpa [#allocation4 + $0x1], 0 }
   0x5   :  { %14 = vsyncpa [#allocation7], 0 }
   0x6   :  { %15 = vsyncpa [#allocation11], 0 }
   0x7   :  { %16 = vsyncpa [#allocation5], 0 }
   0x8   :  { %18 = vsyncpa [#allocation5 + $0x1], 0  ;;  %s1090_s21 = smov 0   ;;  %s1092_s22 = smov 0  }
   0x9   :  { %s1094_s23 = smov 0   ;;  %s1096_s24 = smov 0  }
   0xa   :  { %s1098_s25 = smov 0   ;;  %s1100_s26 = smov 0  }
   0xb LB: > { %1301 = sst [smem:[#allocation19_spill]] %s1031_s23  ;;  %s1121_s27 = sadd.s32 4294967295, %s1043_s26   ;;  %s1043_s26 = sphi %s1100_s26, %s24_s26   ;;  %s1039_s25 = sphi %s1098_s25, %s1321_s25   ;;  %s1035_s24 = sphi %s1096_s24, %s1320_s24   ;;  %s1031_s23 = sphi %s1094_s23, %s1319_s23   ;;  %s1027_s22 = sphi %s1092_s22, %s1323_s22   ;;  %s1023_s21 = sphi %s1090_s21, %s1322_s21  }
   0xc   : > { %1302 = sst [smem:[#allocation20_spill]] %s1039_s25  ;;  %p658_p0 = scmp.ge.s32.totalorder %s1043_s26, 1 }
   0xd   : > { %1303 = sst [smem:[#allocation21_spill]] %s1043_s26  ;;  %p59_p1 = scmp.eq.s32.totalorder %s1121_s27, 0 }
   0xe   : > { %p210_p2 = scmp.lt.s32.totalorder %s1043_s26, 3  ;;  %s1304_s1 = sld [smem:[#allocation26_spill]] }
   0xf   : > { %s1045_s8 = smov [#allocation6]   ;;  %p662_p6 = scmp.ge.s32.totalorder %s1043_s26, 2 }
  0x10   : > { %p1129_p3 = pnand %p658_p0, %p210_p2  ;;  %s226_s9 = sshll.u32 %s1045_s8, 4  ;;  %s227_s9 = int_to_ptr.vmem [resolvable:$true] %s226_s9 }
  0x11   : > { %s1046_s11 = smov 64   ;;  %s1047_s12 = smov 4  }
  0x12   : > { %p707_p4 = pneg %p1129_p3  ;;  %s657_s13 = sadd.s32 4294967294, %s1043_s26  }
  0x13   : > { %s36_s14 = sadd.s32 1, %s1039_s25  ;;  %s45_s15 = sadd.s32 1, %s1031_s23 }
  0x14   : > { %s224_s30 = sshll.u32 %s1304_s1, 4  ;;  %p1137_p5 = pnand %p707_p4, %p59_p1  ;;  %s225_s30 = int_to_ptr.hbm [resolvable:$true] %s224_s30 }
  0x15   : > { %p38_p7 = scmp.ge.s32.totalorder %s36_s14, 2  ;;  %p52_p8 = scmp.ne.s32.totalorder %s1031_s23, %s1027_s22 }
  0x16   : > { %710 = dma.hbm_to_vmem [thread:$0]  (!%p1137_p5), %s225_s30, 128, %s227_s9, [#allocation7], %s1046_s11, %s1046_s11, %s1047_s12  }
  0x17   : > { %p53_p9 = scmp.eq.s32.totalorder %s1043_s26, 0  ;;  %p58_p10 = scmp.ne.s32.totalorder %s1027_s22, %s1023_s21 }
  0x18   : > { %s1325_s14 = smov (%p38_p7, %s36_s14), 0  ;;  %p197_p13 = scmp.eq.s32.totalorder %s1121_s27, 1 }
  0x19   : > { %1307 = sst [smem:[#allocation22_spill]] %s1325_s14  ;;  %p1154_p11 = por %p53_p9, %p52_p8 }
  0x1a   : > { %p1160_p12 = por %p59_p1, %p58_p10  ;;  %s40_s18 = ssub.s32 %s1039_s25, %s1325_s14 }
  0x1b   : > { %p43_p0 = scmp.eq.s32.totalorder %s40_s18, 0  ;;  %p203_p2 = scmp.eq.s32.totalorder %s657_s13, 1 }
  0x1c   : > { %p1167_p4 = por %p197_p13, %p52_p8  ;;  %p731_p7 = scmp.lt.s32.totalorder %s1043_s26, 2 }
  0x1d   : > { %s1173_s20 = scalar_select %p43_p0, %s1031_s23, %s45_s15  }
  0x1e   : > { %p1175_p9 = por %p203_p2, %p58_p10  ;;  %s267_s29 = sand.u32 1, %s1043_s26  }
  0x1f   : > { %1311 = sst [smem:[#allocation23_spill]] %s1173_s20  ;;  %s269_s30 = sand.u32 1, %s1031_s23  }
  0x20   : > { %s1312_s28 = scalar_select %p1175_p9, 1, 0 }
  0x21   : > { %s663_s8 = sshll.u32 %s269_s30, 2  ;;  %s664_s9 = sshll.u32 %s1039_s25, 2 }
  0x22   : > { %1313 = sst [smem:[#allocation24_spill]] %s1312_s28  ;;  %s271_s1 = scalar_lea.vmem [#allocation3], %s663_s8 }
  0x23   : > { %s1314_s0 = sld [smem:[#allocation25_spill]]  ;;  %s280_s14 = sshll.u32 %s271_s1, 4  ;;  %s281_s14 = int_to_ptr.vmem [resolvable:$true] %s280_s14 }
  0x24   : > { %p1189_p8 = pnand %p731_p7, %p1154_p11  ;;  %s295_s30 = scalar_lea.hbm %s1288_s2, %s664_s9 }
  0x25   : > { %s239_s12 = sshll.u32 %s1289_s3, 4  ;;  %s268_s1 = scalar_lea.sflag [#allocation4], %s267_s29  ;;  %s240_s12 = int_to_ptr.hbm [resolvable:$true] %s239_s12 }
  0x26   : > { %s1048_s26 = smov [#allocation9]   ;;  %s1049_s23 = smov [#allocation10]  }
  0x27   : > { %s241_s28 = sshll.u32 %s1048_s26, 4  ;;  %s253_s20 = sshll.u32 %s1049_s23, 4  ;;  %s242_s28 = int_to_ptr.vmem [resolvable:$true] %s241_s28  ;;  %s254_s20 = int_to_ptr.vmem [resolvable:$true] %s253_s20 }
  0x28   : > { %713 = dma.hbm_to_vmem [thread:$0]  (!%p1137_p5), %s240_s12, 64, %s242_s28, [#allocation7]  }
  0x29   : > { %s276_s18 = scalar_lea.hbm %s1314_s0, %s664_s9  ;;  %s251_s0 = sshll.u32 %s1290_s4, 4  ;;  %s252_s0 = int_to_ptr.hbm [resolvable:$true] %s251_s0 }
  0x2a   : > { %s278_s13 = sshll.u32 %s276_s18, 4  ;;  %s297_s25 = sshll.u32 %s295_s30, 4  ;;  %s279_s13 = int_to_ptr.hbm [resolvable:$true] %s278_s13  ;;  %s298_s25 = int_to_ptr.hbm [resolvable:$true] %s297_s25 }
  0x2b   : > { %720 = dma.hbm_to_vmem [thread:$0]  (!%p1189_p8), %s279_s13, 64, %s281_s14, %s268_s1  }
  0x2c   : > { %716 = dma.hbm_to_vmem [thread:$0]  (!%p1137_p5), %s252_s0, 64, %s254_s20, [#allocation11]  }
  0x2d   : > { %s291_s29 = scalar_lea.vmem [#allocation8], %s663_s8  ;;  %308 = sbr.rel (%p1129_p3) target bundleno = 452 (0x1c4), region = 44 }
  0x2e   : > { %s299_s14 = sshll.u32 %s291_s29, 4  ;;  %s310_s26 = sand.u32 (!%p1129_p3), 1, %s1121_s27   ;;  %s300_s14 = int_to_ptr.vmem [resolvable:$true] %s299_s14 }
  0x2f   : > { %723 = dma.hbm_to_vmem [thread:$0]  (!%p1189_p8), %s298_s25, 64, %s300_s14, %s268_s1  }
  0x30   : > { %s1214_s28 = sand.u32 (!%p1129_p3), 1, %s1027_s22   ;;  %s311_s13 = scalar_lea.sflag (!%p1129_p3), [#allocation4], %s310_s26 }
  0x31   : > { %s668_s9 = sshll.u32 (!%p1129_p3), %s1214_s28, 2 }
  0x32   : > { %s314_s30 = scalar_lea.vmem [#allocation3], %s668_s9 }
  0x33   : > { %998 = dma.done.wait (%p1160_p12), %s311_s13, 64  }
  0x34   : > { %1000 = vsyncadd (%p1160_p12), %s311_s13, 4294967232 }
  0x35   : > { %1002 = dma.done.wait (%p59_p1), [#allocation7], 128  }
  0x36   : > { %1004 = vsyncadd (%p59_p1), [#allocation7], 4294967168  ;;  %s329_s0 = scalar_lea.vmem [#allocation8], %s668_s9 }
  0x37   : > { %1006 = dma.done.wait (%p1160_p12), %s311_s13, 64  }
  0x38   : > { %1008 = vsyncadd (%p1160_p12), %s311_s13, 4294967232 }
  0x39   : > { %1010 = dma.done.wait (%p59_p1), [#allocation7], 64  }
  0x3a   : > { %1012 = vsyncadd (%p59_p1), [#allocation7], 4294967232 }
  0x3b   : > { %1014 = dma.done.wait (%p59_p1), [#allocation11], 64  }
  0x3c   : > { %1016 = vsyncadd (%p59_p1), [#allocation11], 4294967232  ;;  %vm380_vm0 = vcmask 130048   ;;  %v1050_v0 = vmov 0.0   ;;  %v688_v1 = vld [vmem:[#allocation6] sm:$0xff]  ;;  %s1051_s7 = smov 120  }
  0x3d   : > { %381 = vst.msk [vmem:[#allocation2] sm:$0xff] %vm380_vm0, %v1050_v0  ;;  %v418_v2 = vld [vmem:[%s329_s0] sm:$0xf]  ;;  %403 = vmatpush.bf16.msra.mxu0 %v688_v1  ;;  %v383_v4 = vld [vmem:[%s314_s30] sm:$0xf]  ;;  %vm424_vm1 = vcmask 1043456  }
  0x3e   : > { %v466_v3 = vunpack.c.l.b16 %v418_v2  ;;  %v414_v6 = vld [vmem:[#allocation9] sm:$0xf]  ;;  %v415_v8 = vld [vmem:[#allocation10] sm:$0xf]  ;;  %vm420_vm2 = vcmask 64512   ;;  %s673_s27 = sshll.u32 %s1214_s28, 4 }
  0x3f   : > { %v445_v7 = vsel %vm424_vm1, %v414_v6, 0  ;;  %v426_v9 = vsel %vm424_vm1, %v415_v8, 0  ;;  %v794_v22 = vld [vmem:[%s1291_s5] ss:$0 sm:$0xff]  ;;  %s373_s8 = scalar_lea.vmem [#allocation12], %s673_s27  ;;  %s685_s15 = sshll.u32 %s1035_s24, 3 }
  0x40   : > { %v467_v5 = vpack.c.b16 %v466_v3, %v466_v3  ;;  %678 = vmatmul.msk.bf16.vlgmr.msra.gmra.mxu0 %vm380_vm0, %v383_v4  ;;  %454 = vmatpush.bf16.msra.mxu2 %v445_v7  ;;  %s519_s1 = scalar_lea.hbm %s1292_s6, %s685_s15  ;;  %s520_s16 = sshll.u32 %s373_s8, 4  ;;  %s521_s16 = int_to_ptr.vmem [resolvable:$true] %s520_s16 }
  0x41   : > { %499 = vmatpush.bf16.msrb.mxu0 %v445_v7  ;;  %435 = vmatpush.bf16.msra.mxu1 %v426_v9  ;;  %s522_s18 = sshll.u32 %s519_s1, 4  ;;  %s509_s23 = scalar_lea.sflag [#allocation5], %s1214_s28  ;;  %s523_s18 = int_to_ptr.hbm [resolvable:$true] %s522_s18 }
  0x42   : > { %468 = vrot.lane.b32.xlu0 %v467_v5, %s1051_s7  ;;  %480 = vmatpush.bf16.msra.mxu3 %v426_v9  ;;  %s959_s20 = sshra.s32 %s523_s18, 4  ;;  %s965_s14 = scalar_lea.hbm %s1292_s6, 32  ;;  %s960_s20 = int_to_ptr.hbm [resolvable:$true] %s959_s20 }
  0x43   : > { %s961_s25 = scalar_lea.hbm %s960_s20, 16  ;;  %p966_p10 = scmp.lt.s32.totalorder %s960_s20, %s1292_s6 }
  0x44   : > { %679 = vmatmul.msk.bf16.vlgmr.msra.gmra.mxu1 %vm420_vm2, %v418_v2  ;;  %v382_v11 = vld [vmem:[#allocation2] sm:$0xff]  ;;  %p962_p1 = scmp.ne.s32.totalorder %s960_s20, %s961_s25  ;;  %p967_p11 = scmp.lt.s32.totalorder %s965_s14, %s961_s25 }
  0x46   : > { %p963_p3 = pnand %p962_p1, %p1167_p4  ;;  %p968_p12 = por %p967_p11, %p966_p10 }
  0x48   : > { %p964_p5 = pneg %p963_p3 }
  0x4a   : > { %p969_p13 = pnand %p968_p12, %p964_p5 }
  0xb4   : > { %v469_v10 = vpop.permute.xlu0 %468 }
  0xb5   : > { %681 = vmatmul.msk.bf16.vlgmr.msra.gmra.mxu3 %vm420_vm2, %v469_v10 }
  0xbd   : > { %v405_v12 = vpop.f32.mrf.mxu0 }
  0xbe   : > { %v409_v13 = vadd.f32 %v405_v12, %v382_v11 }
  0xc0   : > { %410 = vst.msk [vmem:[#allocation2] sm:$0xff] %vm380_vm0, %v409_v13 }
  0xc1   : > { %v437_v17 = vpop.f32.mrf.mxu1 }
  0xc5   : > { %v407_v14 = vpop.f32.mrf.mxu0 }
  0xc7   : > { %v417_v15 = vld [vmem:[#allocation2] sm:$0xff] }
  0xc8   : > { %v419_v16 = vpack.c.bf16 %v417_v15, %v417_v15 }
  0xc9   : > { %v439_v18 = vpop.f32.mrf.mxu1 }
  0xca   : > { %487 = vrot.lane.b32.xlu0 %v419_v16, %s1051_s7  ;;  %680 = vmatmul.msk.bf16.vlgmr.msra.gmra.mxu2 %vm420_vm2, %v419_v16 }
 0x138   : > { %v482_v19 = vpop.f32.mrf.mxu3 }
 0x13c   : > { %v488_v20 = vpop.permute.xlu0 %487 }
 0x13d   : > { %682 = vmatmul.msk.bf16.vlgmr.msrb.gmra.mxu0 %vm420_vm2, %v488_v20 }
 0x140   : > { %v484_v21 = vpop.f32.mrf.mxu3 }
 0x14d   : > { %v456_v23 = vpop.f32.mrf.mxu2 }
 0x14e   : > { %v457_v24 = vadd.f32 %v456_v23, %v437_v17 }
 0x150   : > { %v463_v25 = vadd.f32 %v794_v22, %v457_v24 }
 0x152   : > { %464 = vst [vmem:[%s373_s8] sm:$0xff] %v463_v25 }
 0x155   : > { %v458_v26 = vpop.f32.mrf.mxu2 }
 0x1ba   : > { %v501_v27 = vpop.f32.mrf.mxu0 }
 0x1bb   : > { %v502_v28 = vadd.f32 %v501_v27, %v482_v19 }
 0x1bd   : > { %v505_v29 = vadd.f32 %v794_v22, %v502_v28 }
 0x1bf   : > { %683 = vst [vmem:[%s373_s8 + $0x8] sm:$0xff] %v505_v29 }
 0x1c0   : > { %972 = shalt.err (!%p969_p13)
}
 0x1c1   : > { %s1052_s28 = smov 128   ;;  %s1053_s13 = smov 256  }
 0x1c2   : > { %s1054_s30 = smov 8   ;;  %v503_v30 = vpop.f32.mrf.mxu0 }
 0x1c3   : > { %705 = dma.vmem_to_hbm [thread:$0]  (%p1167_p4), %s521_s16, 256, %s523_s18, %s509_s23, %s1052_s28, %s1053_s13, %s1054_s30  }
 0x1c4 PF: > { %s1317_s7 = sld [smem:[#allocation21_spill]]  ;;  %s537_s27 = sand.u32 1, %s1023_s21  }
 0x1c5   : > { %p725_p0 = pnand %p662_p6, %p1175_p9  ;;  %s538_s10 = scalar_lea.sflag [#allocation5], %s537_s27 }
 0x1c7   : > { %p726_p2 = pneg %p725_p0 }
 0x1c9   : > { %1018 = dma.done.wait (%p726_p2), %s538_s10, 256  }
 0x1ca   : > { %1020 = vsyncadd (%p726_p2), %s538_s10, 4294967040  ;;  %s24_s26 = sadd.s32 1, %s1317_s7   ;;  %s1318_s17 = sld [smem:[#allocation19_spill]] }
 0x1cb   : > { %p21_p7 = scmp.ge.s32.totalorder %s24_s26, 4   ;;  %s1319_s23 = sld [smem:[#allocation23_spill]] }
 0x1cc   : > { %s1320_s24 = sld [smem:[#allocation20_spill]]  ;;  %s1322_s21 = smov %s1027_s22 }
 0x1cd   : > { %s1321_s25 = sld [smem:[#allocation22_spill]]  ;;  %23 = sbr.rel (!%p21_p7) target bundleno = 11 (0xb), region = 122 }
 0x1d0   : > { %s1323_s22 = smov %s1318_s17 }
 0x1d2   :  { %544 = vsyncpa [#allocation4], 1 }
 0x1d3   :  { %546 = vsyncpa [#allocation4 + $0x1], 1 }
 0x1d4   :  { %547 = vsyncpa [#allocation7], 1 }
 0x1d5   :  { %548 = vsyncpa [#allocation11], 1 }
 0x1d6   :  { %549 = vsyncpa [#allocation5], 1 }
 0x1d7   :  { %551 = vsyncpa [#allocation5 + $0x1], 1 }

</bundles_post_ra>
